<compile_context>
chip_gen: v7x
topology: tpu7x:2x2x1
jax: 0.10.0
libtpu: 0.0.40
codegen_flags: <defaults>
</compile_context>

<pallas_src>
import math

import jax
import jax.numpy as jnp
from jax.experimental import pallas as pl
from jax.experimental.pallas import tpu as pltpu


IN_FEATURES = 784      # 1*28*28, x.flatten(1) of the NCHW input
OUT_FEATURES = 100
LANE = 128


def _round_up(x, m):
    return ((x + m - 1) // m) * m


def _pick_vmem_limit():
    """Generation-dependent VMEM limit: ~3/4 of per-core capacity."""
    cap = 64 << 20                       # conservative fallback (v7x per-TC)
    try:
        cap = int(pltpu.get_tpu_info().vmem_capacity_bytes)
    except Exception:
        pass
    return min((cap * 3) // 4, 100 << 20)


# -----------------------------------------------------------------------------
# Kernel
# -----------------------------------------------------------------------------
def _multitask_fc_kernel(task_ref,            # scalar prefetch (SMEM); only used by index_maps
                         x_ref, w1_ref, w2_ref, w3_ref, o_ref):
    del task_ref  # consumed by the BlockSpec index_maps

    h = x_ref[...].astype(jnp.bfloat16)                       # in-kernel f32 -> bf16 cast
    h = jnp.dot(h, w1_ref[...], preferred_element_type=jnp.float32)
    h = jnp.maximum(h, 0.0).astype(jnp.bfloat16)              # ReLU
    h = jnp.dot(h, w2_ref[...], preferred_element_type=jnp.float32)
    h = jnp.maximum(h, 0.0).astype(jnp.bfloat16)              # ReLU
    o_ref[...] = jnp.dot(h, w3_ref[...],
                         preferred_element_type=jnp.float32).astype(o_ref.dtype)


# -----------------------------------------------------------------------------
# Wrapper
# -----------------------------------------------------------------------------
def multitask_fc_forward(x_nchw, params, task):
    """params hold per-task pre-masked, pre-transposed, lane-padded bf16 weights:
       w{i}_eff: [num_tasks, in_pad, out_pad]."""
    B = x_nchw.shape[0]
    x = x_nchw.reshape(B, -1)                                  # flatten(1); stays f32
    assert x.shape[1] == IN_FEATURES

    w1, w2, w3 = params["w1_eff"], params["w2_eff"], params["w3_eff"]
    in_f = w1.shape[1]          # 784 (K of layer 1)
    h_pad = w1.shape[2]         # hidden padded to a multiple of 128
    out_pad = w3.shape[2]       # 100 -> 128

    # Batch tiling: tb is a multiple of 16 (bf16 sublane packing), up to 512.
    # Only pad the batch up to a multiple of 16 (skipped when already aligned);
    # larger batches rely on cdiv / partial last block instead of jnp.pad.
    tb = min(512, _round_up(B, 16))
    b_eff = _round_up(B, 16)
    if b_eff != B:
        x = jnp.pad(x, ((0, b_eff - B), (0, 0)))
    grid_b = pl.cdiv(b_eff, tb)

    task_arr = jnp.asarray([task], dtype=jnp.int32)

    grid_spec = pltpu.PrefetchScalarGridSpec(
        num_scalar_prefetch=1,
        grid=(grid_b,),
        in_specs=[
            pl.BlockSpec((tb, in_f), lambda b, t: (b, 0)),
            # Per-task effective weights: block index constant across batch
            # steps -> fetched once, stay VMEM-resident; task slice selected
            # straight from HBM via the scalar-prefetch ref.
            pl.BlockSpec((None, in_f, h_pad), lambda b, t: (t[0], 0, 0)),
            pl.BlockSpec((None, h_pad, h_pad), lambda b, t: (t[0], 0, 0)),
            pl.BlockSpec((None, h_pad, out_pad), lambda b, t: (t[0], 0, 0)),
        ],
        out_specs=pl.BlockSpec((tb, out_pad), lambda b, t: (b, 0)),
    )

    out = pl.pallas_call(
        _multitask_fc_kernel,
        out_shape=jax.ShapeDtypeStruct((b_eff, out_pad), jnp.float32),
        grid_spec=grid_spec,
        compiler_params=pltpu.CompilerParams(
            dimension_semantics=("parallel",),       # batch steps independent
            vmem_limit_bytes=_pick_vmem_limit(),     # ~48 MiB v7x, ~96 MiB v5e/v6e
        ),
    )(task_arr, x, w1, w2, w3)

    return out[:B, :OUT_FEATURES]


# -----------------------------------------------------------------------------
# Parameter init (PyTorch-equivalent), masks pre-applied, kernel-friendly layout
# -----------------------------------------------------------------------------
def _kaiming_uniform(key, shape, a=math.sqrt(5)):
    # PyTorch kaiming_uniform_ with a=sqrt(5): bound = gain*sqrt(3)/sqrt(fan_in)
    fan_in = shape[-1]
    gain = math.sqrt(2.0 / (1.0 + a * a))
    bound = math.sqrt(3.0) * gain / math.sqrt(fan_in)
    return jax.random.uniform(key, shape, jnp.float32, -bound, bound)


def _signed_constant(w_raw):
    # signed_constant: sign(w) * (relu_gain / sqrt(fan_in))
    fan_in = w_raw.shape[-1]
    std = math.sqrt(2.0) / math.sqrt(fan_in)
    return jnp.sign(w_raw) * std


def init_params(key, hidden_size, num_tasks):
    """Build PyTorch-style weights/scores, then pre-apply the discrete masks and
    store per-task effective weights pre-transposed to [T, in_pad, out_pad],
    zero-padded so out dims are multiples of 128, in bf16."""
    dims = [(hidden_size, IN_FEATURES),
            (hidden_size, hidden_size),
            (OUT_FEATURES, hidden_size)]
    keys = jax.random.split(key, 2 * len(dims))
    params = {}
    for i, (out_f, in_f) in enumerate(dims, start=1):
        w = _signed_constant(_kaiming_uniform(keys[2 * (i - 1)], (out_f, in_f)))  # [out, in]
        s = _kaiming_uniform(keys[2 * (i - 1) + 1], (num_tasks, out_f, in_f))     # [T, out, in]

        mask = (s >= 0).astype(jnp.float32)            # GetSubnetDiscrete
        w_eff = w[None, :, :] * mask                   # [T, out, in]

        in_pad = in_f if i == 1 else _round_up(in_f, LANE)   # padded hidden feeds layers 2/3
        out_pad = _round_up(out_f, LANE)

        w_t = jnp.zeros((num_tasks, in_pad, out_pad), jnp.float32)
        w_t = w_t.at[:, :in_f, :out_f].set(jnp.transpose(w_eff, (0, 2, 1)))
        params[f"w{i}_eff"] = w_t.astype(jnp.bfloat16)
    return params


# -----------------------------------------------------------------------------
# Pure-JAX reference (same stored params, same bf16-operand / f32-accum recipe)
# TODO(synk): bf16 weights/activations match this reference, not exact fp32
#             PyTorch numerics; validate fp32 tolerance separately if required.
# -----------------------------------------------------------------------------
def _reference_forward(x_nchw, params, task):
    B = x_nchw.shape[0]
    h = x_nchw.reshape(B, -1).astype(jnp.bfloat16)
    for i in range(1, 4):
        w = params[f"w{i}_eff"][task]
        h = jnp.dot(h, w, preferred_element_type=jnp.float32)
        if i < 3:
            h = jnp.maximum(h, 0.0).astype(jnp.bfloat16)
    return h[:, :OUT_FEATURES]


if __name__ == "__main__":
    hidden_size = 32
    num_tasks = 3
    task = 1          # forward path is defined for task >= 0
    B = 2

    key = jax.random.PRNGKey(0)
    k_x, k_p = jax.random.split(key)
    x = jax.random.normal(k_x, (B, 1, 28, 28), jnp.float32)   # NCHW, flatten(1) -> 784
    params = init_params(k_p, hidden_size, num_tasks)

    out = jax.block_until_ready(multitask_fc_forward(x, params, task))

    ref = _reference_forward(x, params, task)
    assert out.shape == (B, OUT_FEATURES)
    assert jnp.allclose(out, ref, rtol=1e-2, atol=1e-2), float(jnp.max(jnp.abs(out - ref)))

    print("KERNEL_OK")
</pallas_src>

<mosaic_0001>
module attributes {stable_mosaic.version = 11 : i64} {
  func.func @_multitask_fc_kernel(%arg0: i32, %arg1: memref<1xi32, #tpu.memory_space<smem>>, %arg2: memref<16x784xf32, #tpu.memory_space<vmem>>, %arg3: memref<1x784x128xbf16, #tpu.memory_space<vmem>>, %arg4: memref<1x128x128xbf16, #tpu.memory_space<vmem>>, %arg5: memref<1x128x128xbf16, #tpu.memory_space<vmem>>, %arg6: memref<16x128xf32, #tpu.memory_space<vmem>>) attributes {dimension_semantics = [#tpu.dimension_semantics<parallel>], iteration_bounds = array<i64: 1>, scalar_prefetch = 1 : i64, scratch_operands = 0 : i64, tpu.core_type = #tpu.core_type<tc>, window_params = [{transform_indices = @transform_0, window_bounds = array<i64: 16, 784>}, {transform_indices = @transform_1, window_bounds = array<i64: 1, 784, 128>}, {transform_indices = @transform_2, window_bounds = array<i64: 1, 128, 128>}, {transform_indices = @transform_3, window_bounds = array<i64: 1, 128, 128>}, {transform_indices = @transform_4, window_bounds = array<i64: 16, 128>}]} {
    %c0 = arith.constant 0 : index
    %c0_0 = arith.constant 0 : index
    %0 = vector.load %arg2[%c0, %c0_0] : memref<16x784xf32, #tpu.memory_space<vmem>>, vector<16x784xf32>
    %1 = arith.truncf %0 : vector<16x784xf32> to vector<16x784xbf16>
    %c0_1 = arith.constant 0 : index
    %c0_2 = arith.constant 0 : index
    %c0_3 = arith.constant 0 : index
    %2 = vector.load %arg3[%c0_1, %c0_2, %c0_3] : memref<1x784x128xbf16, #tpu.memory_space<vmem>>, vector<1x784x128xbf16>
    %3 = vector.shape_cast %2 : vector<1x784x128xbf16> to vector<784x128xbf16>
    %cst = arith.constant dense<0.000000e+00> : vector<16x128xf32>
    %4 = tpu.matmul %1, %3, %cst {dimension_numbers = #tpu.dot_dimension_numbers<[1], [0], [0], [1], [0, 0, 1, 1], [], []>} : vector<16x784xbf16>, vector<784x128xbf16>, vector<16x128xf32> -> vector<16x128xf32>
    %cst_4 = arith.constant 0.000000e+00 : f32
    %5 = vector.broadcast %cst_4 : f32 to vector<16x128xf32>
    %6 = arith.maximumf %4, %5 : vector<16x128xf32>
    %7 = arith.truncf %6 : vector<16x128xf32> to vector<16x128xbf16>
    %c0_5 = arith.constant 0 : index
    %c0_6 = arith.constant 0 : index
    %c0_7 = arith.constant 0 : index
    %8 = vector.load %arg4[%c0_5, %c0_6, %c0_7] : memref<1x128x128xbf16, #tpu.memory_space<vmem>>, vector<1x128x128xbf16>
    %9 = vector.shape_cast %8 : vector<1x128x128xbf16> to vector<128x128xbf16>
    %cst_8 = arith.constant dense<0.000000e+00> : vector<16x128xf32>
    %10 = tpu.matmul %7, %9, %cst_8 {dimension_numbers = #tpu.dot_dimension_numbers<[1], [0], [0], [1], [0, 0, 1, 1], [], []>} : vector<16x128xbf16>, vector<128x128xbf16>, vector<16x128xf32> -> vector<16x128xf32>
    %cst_9 = arith.constant 0.000000e+00 : f32
    %11 = vector.broadcast %cst_9 : f32 to vector<16x128xf32>
    %12 = arith.maximumf %10, %11 : vector<16x128xf32>
    %13 = arith.truncf %12 : vector<16x128xf32> to vector<16x128xbf16>
    %c0_10 = arith.constant 0 : index
    %c0_11 = arith.constant 0 : index
    %c0_12 = arith.constant 0 : index
    %14 = vector.load %arg5[%c0_10, %c0_11, %c0_12] : memref<1x128x128xbf16, #tpu.memory_space<vmem>>, vector<1x128x128xbf16>
    %15 = vector.shape_cast %14 : vector<1x128x128xbf16> to vector<128x128xbf16>
    %cst_13 = arith.constant dense<0.000000e+00> : vector<16x128xf32>
    %16 = tpu.matmul %13, %15, %cst_13 {dimension_numbers = #tpu.dot_dimension_numbers<[1], [0], [0], [1], [0, 0, 1, 1], [], []>} : vector<16x128xbf16>, vector<128x128xbf16>, vector<16x128xf32> -> vector<16x128xf32>
    %c0_14 = arith.constant 0 : index
    %c0_15 = arith.constant 0 : index
    %17 = vector.load %arg6[%c0_14, %c0_15] : memref<16x128xf32, #tpu.memory_space<vmem>>, vector<16x128xf32>
    tpu.vector_store %arg6[%c0_14, %c0_15], %16 {strides = array<i32>} : memref<16x128xf32, #tpu.memory_space<vmem>>, vector<16x128xf32>,
    return
  }
  func.func @transform_0(%arg0: i32, %arg1: memref<1xi32, #tpu.memory_space<smem>>) -> (i32, i32) {
    %c0_i32 = arith.constant 0 : i32
    %c0_i32_0 = arith.constant 0 : i32
    return %arg0, %c0_i32 : i32, i32
  }
  func.func @transform_1(%arg0: i32, %arg1: memref<1xi32, #tpu.memory_space<smem>>) -> (i32, i32, i32) {
    %c0 = arith.constant 0 : index
    %0 = memref.load %arg1[%c0] : memref<1xi32, #tpu.memory_space<smem>>
    %c0_i32 = arith.constant 0 : i32
    %c0_i32_0 = arith.constant 0 : i32
    %c0_i32_1 = arith.constant 0 : i32
    return %0, %c0_i32, %c0_i32_0 : i32, i32, i32
  }
  func.func @transform_2(%arg0: i32, %arg1: memref<1xi32, #tpu.memory_space<smem>>) -> (i32, i32, i32) {
    %c0 = arith.constant 0 : index
    %0 = memref.load %arg1[%c0] : memref<1xi32, #tpu.memory_space<smem>>
    %c0_i32 = arith.constant 0 : i32
    %c0_i32_0 = arith.constant 0 : i32
    %c0_i32_1 = arith.constant 0 : i32
    return %0, %c0_i32, %c0_i32_0 : i32, i32, i32
  }
  func.func @transform_3(%arg0: i32, %arg1: memref<1xi32, #tpu.memory_space<smem>>) -> (i32, i32, i32) {
    %c0 = arith.constant 0 : index
    %0 = memref.load %arg1[%c0] : memref<1xi32, #tpu.memory_space<smem>>
    %c0_i32 = arith.constant 0 : i32
    %c0_i32_0 = arith.constant 0 : i32
    %c0_i32_1 = arith.constant 0 : i32
    return %0, %c0_i32, %c0_i32_0 : i32, i32, i32
  }
  func.func @transform_4(%arg0: i32, %arg1: memref<1xi32, #tpu.memory_space<smem>>) -> (i32, i32) {
    %c0_i32 = arith.constant 0 : i32
    %c0_i32_0 = arith.constant 0 : i32
    return %arg0, %c0_i32 : i32, i32
  }
}

</mosaic_0001>

<bundles_post_ra>
// kernel: tpu_custom_call.1
= control target key start
LH: loop header
LB: loop body
LE: loop exit
PB: predicated region body
PF: predicated region fallthrough
CT: control target
= control target key end

     0   :  { %11 = vsyncpa [#allocation5], 0  ;;  %s1455_s0 = inlined_call_operand.<no memory space> [shape: s32[1], index: 0, kind: input, shape index: {}]   ;;  %s1456_s1 = inlined_call_operand.hbm [shape: f32[16,784], index: 1, kind: input, shape index: {}]   ;;  %s1457_s2 = inlined_call_operand.hbm [shape: bf16[3,784,128], index: 2, kind: input, shape index: {}]   ;;  %s1458_s3 = inlined_call_operand.hbm [shape: bf16[3,128,128], index: 3, kind: input, shape index: {}]   ;;  %s1459_s4 = inlined_call_operand.hbm [shape: bf16[3,128,128], index: 4, kind: input, shape index: {}]   ;;  %s1460_s5 = inlined_call_operand.hbm [shape: f32[16,128], index: 5, kind: output, shape index: {}]  }
   0x1   :  { %12 = vsyncpa [#allocation8], 0 }
   0x2   :  { %13 = vsyncpa [#allocation11], 0  ;;  %s1120_s20 = smul.u32 6272, %s1455_s0 }
   0x3   :  { %14 = vsyncpa [#allocation6], 0  ;;  %s1323_s21 = smov [#allocation7]   ;;  %s1201_s29 = scalar_lea.hbm %s1457_s2, 18816 }
   0x4   :  { %s36_s22 = sshll.u32 %s1323_s21, 4  ;;  %s35_s25 = scalar_lea.hbm %s1457_s2, %s1120_s20  ;;  %s37_s22 = int_to_ptr.vmem [resolvable:$true] %s36_s22 }
   0x5   :  { %s1199_s26 = scalar_lea.hbm %s35_s25, 6272  ;;  %p1202_p1 = scmp.lt.u32.totalorder %s35_s25, %s1457_s2 }
   0x6   :  { %p1200_p0 = scmp.ne.s32.totalorder %s35_s25, %s1199_s26  ;;  %p1203_p2 = scmp.lt.u32.totalorder %s1201_s29, %s1199_s26 }
   0x7   :  { %p1205_p4 = scmp.lt.u32.totalorder %s1199_s26, %s35_s25 }
   0x8   :  { %p1204_p3 = por %p1203_p2, %p1202_p1 }
   0xa   :  { %p1206_p5 = por %p1205_p4, %p1204_p3 }
   0xc   :  { %p1207_p6 = pnand %p1206_p5, %p1200_p0 }
   0xe   :  { %1210 = shalt.err (!%p1207_p6)
}
   0xf   :  { %s1211_s7 = scalar_lea.vmem %s37_s22, 6272  ;;  %p1216_p8 = scmp.lt.s32.totalorder %s37_s22, %s37_s22 }
  0x10   :  { %p1212_p7 = scmp.ne.s32.totalorder %s37_s22, %s1211_s7  ;;  %p1217_p9 = scmp.lt.s32.totalorder %s1211_s7, %s1211_s7 }
  0x12   :  { %p1218_p10 = por %p1217_p9, %p1216_p8 }
  0x14   :  { %p1219_p11 = pnand %p1218_p10, %p1212_p7 }
  0x16   :  { %1222 = shalt.err (!%p1219_p11)
}
  0x17   :  { %s1324_s8 = smov 64   ;;  %s1325_s9 = smov 4  }
  0x18   :  { %42 = dma.hbm_to_vmem [thread:$0]  %s35_s25, 6272, %s37_s22, [#allocation8], %s1324_s8, %s1324_s8, %s1325_s9  }
  0x19   :  { %s1326_s2 = smov [#allocation4]   ;;  %s1223_s13 = scalar_lea.hbm %s1456_s1, 1792 }
  0x1a   :  { %s20_s10 = sshll.u32 %s1326_s2, 4  ;;  %p1224_p12 = scmp.ne.s32.totalorder %s1456_s1, %s1223_s13  ;;  %s21_s10 = int_to_ptr.vmem [resolvable:$true] %s20_s10 }
  0x1b   :  { %p1227_p13 = scmp.lt.u32.totalorder %s1223_s13, %s1456_s1 }
  0x1d   :  { %p1229_p0 = pnand %p1227_p13, %p1224_p12 }
  0x1f   :  { %1232 = shalt.err (!%p1229_p0)
}
  0x20   :  { %s1233_s18 = scalar_lea.vmem %s21_s10, 1792  ;;  %p1238_p2 = scmp.lt.s32.totalorder %s21_s10, %s21_s10 }
  0x21   :  { %p1234_p1 = scmp.ne.s32.totalorder %s21_s10, %s1233_s18  ;;  %p1239_p3 = scmp.lt.s32.totalorder %s1233_s18, %s1233_s18 }
  0x23   :  { %p1240_p4 = por %p1239_p3, %p1238_p2 }
  0x25   :  { %p1241_p5 = pnand %p1240_p4, %p1234_p1 }
  0x27   :  { %1244 = shalt.err (!%p1241_p5)
}
  0x28   :  { %s1327_s19 = smov 896   ;;  %s1328_s20 = smov 56  }
  0x29   :  { %26 = dma.hbm_to_vmem [thread:$0]  %s1456_s1, 1792, %s21_s10, [#allocation5], %s1327_s19, %s1327_s19, %s1328_s20  }
  0x2a   :  { %s986_s25 = sshll.u32 %s1455_s0, 10  ;;  %s1329_s29 = smov [#allocation9]  }
  0x2b   :  { %s51_s28 = scalar_lea.hbm %s1458_s3, %s986_s25  ;;  %s52_s30 = sshll.u32 %s1329_s29, 4  ;;  %s53_s30 = int_to_ptr.vmem [resolvable:$true] %s52_s30 }
  0x2c   :  { %s1245_s6 = scalar_lea.hbm %s51_s28, 1024  ;;  %s1247_s11 = scalar_lea.hbm %s1458_s3, 3072 }
  0x2d   :  { %p1246_p6 = scmp.ne.s32.totalorder %s51_s28, %s1245_s6  ;;  %p1248_p7 = scmp.lt.u32.totalorder %s51_s28, %s1458_s3 }
  0x2e   :  { %p1249_p8 = scmp.lt.u32.totalorder %s1247_s11, %s1245_s6  ;;  %p1251_p10 = scmp.lt.u32.totalorder %s1245_s6, %s51_s28 }
  0x30   :  { %p1250_p9 = por %p1249_p8, %p1248_p7 }
  0x32   :  { %p1252_p11 = por %p1251_p10, %p1250_p9 }
  0x34   :  { %p1253_p12 = pnand %p1252_p11, %p1246_p6 }
  0x36   :  { %1256 = shalt.err (!%p1253_p12)
}
  0x37   :  { %s1257_s0 = scalar_lea.vmem %s53_s30, 1024  ;;  %p1262_p0 = scmp.lt.s32.totalorder %s53_s30, %s53_s30 }
  0x38   :  { %p1258_p13 = scmp.ne.s32.totalorder %s53_s30, %s1257_s0  ;;  %p1263_p1 = scmp.lt.s32.totalorder %s1257_s0, %s1257_s0 }
  0x3a   :  { %p1264_p2 = por %p1263_p1, %p1262_p0 }
  0x3c   :  { %p1265_p3 = pnand %p1264_p2, %p1258_p13 }
  0x3e   :  { %1268 = shalt.err (!%p1265_p3)
}
  0x3f   :  { %58 = dma.hbm_to_vmem [thread:$0]  %s51_s28, 1024, %s53_s30, [#allocation8], %s1324_s8, %s1324_s8, %s1325_s9  }
  0x40   :  { %s67_s3 = scalar_lea.hbm %s1459_s4, %s986_s25  ;;  %s1330_s14 = smov [#allocation10]  }
  0x41   :  { %s68_s15 = sshll.u32 %s1330_s14, 4  ;;  %s1269_s16 = scalar_lea.hbm %s67_s3, 1024  ;;  %s69_s15 = int_to_ptr.vmem [resolvable:$true] %s68_s15 }
  0x42   :  { %p1270_p4 = scmp.ne.s32.totalorder %s67_s3, %s1269_s16  ;;  %s1271_s19 = scalar_lea.hbm %s1459_s4, 3072 }
  0x43   :  { %p1272_p5 = scmp.lt.u32.totalorder %s67_s3, %s1459_s4  ;;  %p1273_p6 = scmp.lt.u32.totalorder %s1271_s19, %s1269_s16 }
  0x44   :  { %p1275_p8 = scmp.lt.u32.totalorder %s1269_s16, %s67_s3 }
  0x45   :  { %p1274_p7 = por %p1273_p6, %p1272_p5 }
  0x47   :  { %p1276_p9 = por %p1275_p8, %p1274_p7 }
  0x49   :  { %p1277_p10 = pnand %p1276_p9, %p1270_p4 }
  0x4b   :  { %1280 = shalt.err (!%p1277_p10)
}
  0x4c   :  { %s1281_s22 = scalar_lea.vmem %s69_s15, 1024  ;;  %p1286_p12 = scmp.lt.s32.totalorder %s69_s15, %s69_s15 }
  0x4d   :  { %p1282_p11 = scmp.ne.s32.totalorder %s69_s15, %s1281_s22  ;;  %p1287_p13 = scmp.lt.s32.totalorder %s1281_s22, %s1281_s22 }
  0x4f   :  { %p1288_p0 = por %p1287_p13, %p1286_p12 }
  0x51   :  { %p1289_p1 = pnand %p1288_p0, %p1282_p11 }
  0x53   :  { %1292 = shalt.err (!%p1289_p1)
}
  0x54   :  { %74 = dma.hbm_to_vmem [thread:$0]  %s67_s3, 1024, %s69_s15, [#allocation11], %s1324_s8, %s1324_s8, %s1325_s9  }
  0x55   :  { %1315 = dma.done.wait [#allocation5], 1792  }
  0x56   :  { %1316 = vsyncadd [#allocation5], 4294965504 }
  0x57   :  { %1317 = dma.done.wait [#allocation8], 7296  }
  0x58   :  { %1318 = vsyncadd [#allocation8], 4294960000 }
  0x59   :  { %1319 = dma.done.wait [#allocation11], 1024  }
  0x5a   :  { %1320 = vsyncadd [#allocation11], 4294966272  ;;  %v1134_v0 = vld [vmem:[#allocation7 + $0x40] sm:$0xff]   ;;  %v1138_v4 = vld [vmem:[#allocation7 + $0x48] sm:$0xff]   ;;  %v1331_v43 = vmov 0.0   ;;  %vm1332_vm0 = vmmov 0  }
  0x5b   :  { %v1135_v1 = vld [vmem:[#allocation7 + $0xc0] sm:$0xff]   ;;  %988 = vmatprep.subr.bf16.mxu0 %v1134_v0  ;;  %v1139_v5 = vld [vmem:[#allocation7 + $0xc8] sm:$0xff]   ;;  %v1142_v8 = vld [vmem:[#allocation7 + $0x50] sm:$0xff]   ;;  %vm504_vm1 = vcmask 130048   ;;  %s1333_s4 = smov [#allocation12]  }
  0x5c   :  { %v1136_v2 = vld [vmem:[#allocation7] sm:$0xff]   ;;  %1010 = vmatprep.subr.bf16.mxu1 %v1135_v1  ;;  %v1140_v6 = vld [vmem:[#allocation7 + $0x8] sm:$0xff]   ;;  %v1143_v9 = vld [vmem:[#allocation7 + $0xd0] sm:$0xff]   ;;  %s895_s8 = sshll.u32 %s1333_s4, 4  ;;  %s896_s8 = int_to_ptr.vmem [resolvable:$true] %s895_s8 }
  0x5d   :  { %v1137_v3 = vld [vmem:[#allocation7 + $0x80] sm:$0xff]   ;;  %989 = vmatpush3.bf16.msra.mxu0 %v1136_v2  ;;  %v1141_v7 = vld [vmem:[#allocation7 + $0x88] sm:$0xff]   ;;  %v1144_v10 = vld [vmem:[#allocation7 + $0x10] sm:$0xff]   ;;  %s1293_s9 = scalar_lea.vmem %s896_s8, 256  ;;  %p1298_p3 = scmp.lt.s32.totalorder %s896_s8, %s896_s8 }
  0x5e   :  { %1011 = vmatpush3.bf16.msra.mxu1 %v1137_v3  ;;  %990 = vmatprep.subr.bf16.mxu0 %v1138_v4  ;;  %v1145_v11 = vld [vmem:[#allocation7 + $0x90] sm:$0xff]   ;;  %v1146_v12 = vld [vmem:[#allocation7 + $0x58] sm:$0xff]   ;;  %v1150_v16 = vld [vmem:[#allocation7 + $0x60] sm:$0xff]   ;;  %p1294_p2 = scmp.ne.s32.totalorder %s896_s8, %s1293_s9  ;;  %p1299_p4 = scmp.lt.s32.totalorder %s1293_s9, %s1293_s9 }
  0x5f   :  { %1012 = vmatprep.subr.bf16.mxu1 %v1139_v5  ;;  %v1147_v13 = vld [vmem:[#allocation7 + $0xd8] sm:$0xff]   ;;  %v1151_v17 = vld [vmem:[#allocation7 + $0xe0] sm:$0xff]   ;;  %v1154_v20 = vld [vmem:[#allocation7 + $0x68] sm:$0xff]  }
  0x60   :  { %v1148_v14 = vld [vmem:[#allocation7 + $0x18] sm:$0xff]   ;;  %v1152_v18 = vld [vmem:[#allocation7 + $0x20] sm:$0xff]   ;;  %v1155_v21 = vld [vmem:[#allocation7 + $0xe8] sm:$0xff]   ;;  %p1300_p5 = por %p1299_p4, %p1298_p3 }
  0x61   :  { %991 = vmatpush3.bf16.msra.mxu0 %v1140_v6  ;;  %v1149_v15 = vld [vmem:[#allocation7 + $0x98] sm:$0xff]   ;;  %v1153_v19 = vld [vmem:[#allocation7 + $0xa0] sm:$0xff]   ;;  %v1156_v22 = vld [vmem:[#allocation7 + $0x28] sm:$0xff]  }
  0x62   :  { %1013 = vmatpush3.bf16.msra.mxu1 %v1141_v7  ;;  %992 = vmatprep.subr.bf16.mxu0 %v1142_v8  ;;  %v1157_v23 = vld [vmem:[#allocation7 + $0xa8] sm:$0xff]   ;;  %v1158_v24 = vld [vmem:[#allocation7 + $0x70] sm:$0xff]   ;;  %v1162_v28 = vld [vmem:[#allocation7 + $0x78] sm:$0xff]   ;;  %p1301_p6 = pnand %p1300_p5, %p1294_p2 }
  0x63   :  { %1014 = vmatprep.subr.bf16.mxu1 %v1143_v9  ;;  %v1159_v25 = vld [vmem:[#allocation7 + $0xf0] sm:$0xff]   ;;  %v1163_v29 = vld [vmem:[#allocation7 + $0xf8] sm:$0xff]   ;;  %v94_v34 = vld [vmem:[#allocation4 + $0x18] sm:$0xff] }
  0x64   :  { %v1160_v26 = vld [vmem:[#allocation7 + $0x30] sm:$0xff]   ;;  %v1164_v30 = vld [vmem:[#allocation7 + $0x38] sm:$0xff]   ;;  %v101_v36 = vld [vmem:[#allocation4 + $0x50] sm:$0xff] }
  0x65   :  { %993 = vmatpush3.bf16.msra.mxu0 %v1144_v10  ;;  %v1161_v27 = vld [vmem:[#allocation7 + $0xb0] sm:$0xff]   ;;  %v1165_v31 = vld [vmem:[#allocation7 + $0xb8] sm:$0xff]   ;;  %v98_v38 = vld [vmem:[#allocation4 + $0x38] sm:$0xff]  ;;  %v108_v39 = vpack.c.bf16 %v101_v36, %v94_v34 }
  0x66   :  { %1015 = vmatpush3.bf16.msra.mxu1 %v1145_v11  ;;  %994 = vmatprep.subr.bf16.mxu0 %v1146_v12  ;;  %v92_v32 = vld [vmem:[#allocation4 + $0x8] sm:$0xff]  ;;  %v99_v33 = vld [vmem:[#allocation4 + $0x40] sm:$0xff]  ;;  %v93_v41 = vld [vmem:[#allocation4 + $0x10] sm:$0xff] }
  0x67   :  { %1016 = vmatprep.subr.bf16.mxu1 %v1147_v13  ;;  %v106_v35 = vpack.c.bf16 %v99_v33, %v92_v32  ;;  %v91_v37 = vld [vmem:[#allocation4] sm:$0xff]  ;;  %v100_v42 = vld [vmem:[#allocation4 + $0x48] sm:$0xff]  ;;  %v1166_v45 = vld [vmem:[#allocation7 + $0x140] sm:$0xff]   ;;  %581 = vmatprep.mubr.bf16.mxu1 %v108_v39 }
  0x68   :  { %v105_v40 = vpack.c.bf16 %v98_v38, %v91_v37  ;;  %v107_v44 = vpack.c.bf16 %v100_v42, %v93_v41  ;;  %v1167_v46 = vld [vmem:[#allocation7 + $0x100] sm:$0xff]   ;;  %v1168_v47 = vld [vmem:[#allocation7 + $0x148] sm:$0xff]   ;;  %v1170_v49 = vld [vmem:[#allocation7 + $0x150] sm:$0xff]  }
  0x69   :  { %995 = vmatpush3.bf16.msra.mxu0 %v1148_v14  ;;  %540 = vmatprep.mubr.bf16.mxu0 %v106_v35  ;;  %v1169_v48 = vld [vmem:[#allocation7 + $0x108] sm:$0xff]   ;;  %v1171_v50 = vld [vmem:[#allocation7 + $0x110] sm:$0xff]   ;;  %v1172_v51 = vld [vmem:[#allocation7 + $0x158] sm:$0xff]  }
  0x6a   :  { %1017 = vmatpush3.bf16.msra.mxu1 %v1149_v15  ;;  %996 = vmatprep.subr.bf16.mxu0 %v1150_v16  ;;  %v1173_v52 = vld [vmem:[#allocation7 + $0x118] sm:$0xff]   ;;  %v1174_v53 = vld [vmem:[#allocation7 + $0x160] sm:$0xff]   ;;  %v1176_v55 = vld [vmem:[#allocation7 + $0x168] sm:$0xff]  }
  0x6b   :  { %1018 = vmatprep.subr.bf16.mxu1 %v1151_v17  ;;  %v1175_v54 = vld [vmem:[#allocation7 + $0x120] sm:$0xff]   ;;  %v96_v57 = vld [vmem:[#allocation4 + $0x28] sm:$0xff]  ;;  %v1177_v58 = vld [vmem:[#allocation7 + $0x128] sm:$0xff]  }
  0x6c   :  { %v1182_v56 = vld [vmem:[#allocation7 + $0x180] sm:$0xff]   ;;  %v103_v59 = vld [vmem:[#allocation4 + $0x60] sm:$0xff]  ;;  %v104_v63 = vld [vmem:[#allocation4 + $0x68] sm:$0xff] }
  0x6d   :  { %997 = vmatpush3.bf16.msra.mxu0 %v1152_v18  ;;  %v1178_v60 = vld [vmem:[#allocation7 + $0x170] sm:$0xff]   ;;  %v110_v61 = vpack.c.bf16 %v103_v59, %v96_v57  ;;  %v97_v62 = vld [vmem:[#allocation4 + $0x30] sm:$0xff]  ;;  %v1180_v2 = vld [vmem:[#allocation7 + $0x178] sm:$0xff]  }
  0x6e   :  { %1019 = vmatpush3.bf16.msra.mxu1 %v1153_v19  ;;  %998 = vmatprep.subr.bf16.mxu0 %v1154_v20  ;;  %v111_v0 = vpack.c.bf16 %v104_v63, %v97_v62  ;;  %v1179_v1 = vld [vmem:[#allocation7 + $0x130] sm:$0xff]   ;;  %v1181_v3 = vld [vmem:[#allocation7 + $0x138] sm:$0xff]   ;;  %v102_v5 = vld [vmem:[#allocation4 + $0x58] sm:$0xff] }
  0x6f   :  { %1020 = vmatprep.subr.bf16.mxu1 %v1155_v21  ;;  %v95_v4 = vld [vmem:[#allocation4 + $0x20] sm:$0xff]  ;;  %v1183_v7 = vld [vmem:[#allocation9] sm:$0xff]   ;;  %v1185_v9 = vld [vmem:[#allocation9 + $0x10] sm:$0xff]  }
  0x70   :  { %v109_v6 = vpack.c.bf16 %v102_v5, %v95_v4  ;;  %v1184_v8 = vld [vmem:[#allocation9 + $0x8] sm:$0xff]   ;;  %v1186_v10 = vld [vmem:[#allocation9 + $0x18] sm:$0xff]   ;;  %v1187_v11 = vld [vmem:[#allocation9 + $0x20] sm:$0xff]  }
  0x71   :  { %999 = vmatpush3.bf16.msra.mxu0 %v1156_v22  ;;  %v1188_v12 = vld [vmem:[#allocation9 + $0x28] sm:$0xff]   ;;  %v1189_v13 = vld [vmem:[#allocation9 + $0x30] sm:$0xff]   ;;  %v1190_v14 = vld [vmem:[#allocation9 + $0x38] sm:$0xff]  }
  0x72   :  { %1021 = vmatpush3.bf16.msra.mxu1 %v1157_v23  ;;  %1000 = vmatprep.subr.bf16.mxu0 %v1158_v24  ;;  %v1191_v15 = vld [vmem:[#allocation10] sm:$0xff]   ;;  %v1192_v16 = vld [vmem:[#allocation10 + $0x8] sm:$0xff]   ;;  %v1193_v17 = vld [vmem:[#allocation10 + $0x10] sm:$0xff]  }
  0x73   :  { %1022 = vmatprep.subr.bf16.mxu1 %v1159_v25  ;;  %v1194_v18 = vld [vmem:[#allocation10 + $0x18] sm:$0xff]   ;;  %v1195_v19 = vld [vmem:[#allocation10 + $0x20] sm:$0xff]   ;;  %v1196_v20 = vld [vmem:[#allocation10 + $0x28] sm:$0xff]  }
  0x75   :  { %1001 = vmatpush3.bf16.msra.mxu0 %v1160_v26 }
  0x76   :  { %1023 = vmatpush3.bf16.msra.mxu1 %v1161_v27  ;;  %1002 = vmatprep.subr.bf16.mxu0 %v1162_v28 }
  0x77   :  { %1024 = vmatprep.subr.bf16.mxu1 %v1163_v29 }
  0x79   :  { %1003 = vmatpush3.bf16.msra.mxu0 %v1164_v30 }
  0x7a   :  { %1025 = vmatpush3.bf16.msra.mxu1 %v1165_v31  ;;  %1032 = vmatprep.subr.bf16.mxu0 %v1166_v45 }
  0x7b   :  { %1074 = vmatprep.subr.bf16.mxu1 %v1331_v43 }
  0x7c   :  { %541 = vmatmul.mubr.bf16.vlgmr.msra.gmra.mrb[0].mxu0 %v105_v40 }
  0x7d   :  { %582 = vmatmul.mubr.bf16.vlgmr.msra.gmra.mrb[0].mxu1 %v107_v44  ;;  %1033 = vmatpush3.bf16.msra.mxu0 %v1167_v46 }
  0x7e   :  { %1076 = vmatprep.mubr.msk.bf16.mxu1 %vm1332_vm0, %v1331_v43  ;;  %1034 = vmatprep.subr.bf16.mxu0 %v1168_v47 }
  0x7f   :  { %1075 = vmatpush3.bf16.msra.mxu1 %v1182_v56  ;;  %622 = vmatprep.mubr.bf16.mxu0 %v110_v61 }
  0x80   :  { %1080 = vmatprep.subr.bf16.mxu1 %v1331_v43 }
  0x81   :  { %1035 = vmatpush3.bf16.msra.mxu0 %v1169_v48 }
  0x82   :  { %1036 = vmatprep.subr.bf16.mxu0 %v1170_v49 }
  0x85   :  { %1037 = vmatpush3.bf16.msra.mxu0 %v1171_v50  ;;  %1077 = vmatmul.mubr.msk.bf16.vlgmr.msra.gmra.mrb[4].mxu1 %vm504_vm1, %v111_v0 }
  0x86   :  { %1038 = vmatprep.subr.bf16.mxu0 %v1172_v51  ;;  %1096 = vmatprep.mubr.msk.bf16.mxu1 %vm1332_vm0, %v1331_v43 }
  0x87   :  { %1081 = vmatpush3.bf16.msra.mxu1 %v1183_v7 }
  0x88   :  { %1082 = vmatprep.subr.bf16.mxu1 %v1331_v43 }
  0x89   :  { %1039 = vmatpush3.bf16.msra.mxu0 %v1173_v52 }
  0x8a   :  { %1040 = vmatprep.subr.bf16.mxu0 %v1174_v53  ;;  %v1197_v53 = vld [vmem:[#allocation10 + $0x30] sm:$0xff]  }
  0x8b   :  { %1083 = vmatpush3.bf16.msra.mxu1 %v1184_v8 }
  0x8c   :  { %1084 = vmatprep.subr.bf16.mxu1 %v1331_v43 }
  0x8d   :  { %1041 = vmatpush3.bf16.msra.mxu0 %v1175_v54  ;;  %v1198_v54 = vld [vmem:[#allocation10 + $0x38] sm:$0xff]  }
  0x8e   :  { %1042 = vmatprep.subr.bf16.mxu0 %v1176_v55 }
  0x8f   :  { %1085 = vmatpush3.bf16.msra.mxu1 %v1185_v9 }
  0x90   :  { %1086 = vmatprep.subr.bf16.mxu1 %v1331_v43 }
  0x91   :  { %1043 = vmatpush3.bf16.msra.mxu0 %v1177_v58 }
  0x92   :  { %1044 = vmatprep.subr.bf16.mxu0 %v1178_v60 }
  0x93   :  { %1087 = vmatpush3.bf16.msra.mxu1 %v1186_v10 }
  0x94   :  { %1088 = vmatprep.subr.bf16.mxu1 %v1331_v43 }
  0x95   :  { %1045 = vmatpush3.bf16.msra.mxu0 %v1179_v1 }
  0x96   :  { %1046 = vmatprep.subr.bf16.mxu0 %v1180_v2 }
  0x97   :  { %1089 = vmatpush3.bf16.msra.mxu1 %v1187_v11 }
  0x98   :  { %1090 = vmatprep.subr.bf16.mxu1 %v1331_v43 }
  0x99   :  { %1047 = vmatpush3.bf16.msra.mxu0 %v1181_v3 }
  0x9a   :  { %1100 = vmatprep.subr.bf16.mxu0 %v1331_v43 }
  0x9b   :  { %1091 = vmatpush3.bf16.msra.mxu1 %v1188_v12 }
  0x9c   :  { %623 = vmatmul.mubr.bf16.vlgmr.msra.gmra.mrb[4].mxu0 %v109_v6  ;;  %1092 = vmatprep.subr.bf16.mxu1 %v1331_v43 }
  0x9d   :  { %1116 = vmatprep.mubr.msk.bf16.mxu0 %vm1332_vm0, %v1331_v43  ;;  %1101 = vmatpush3.bf16.msra.mxu0 %v1191_v15 }
  0x9e   :  { %1102 = vmatprep.subr.bf16.mxu0 %v1331_v43 }
  0x9f   :  { %1093 = vmatpush3.bf16.msra.mxu1 %v1189_v13 }
  0xa0   :  { %1094 = vmatprep.subr.bf16.mxu1 %v1331_v43 }
  0xa1   :  { %1103 = vmatpush3.bf16.msra.mxu0 %v1192_v16 }
  0xa2   :  { %1104 = vmatprep.subr.bf16.mxu0 %v1331_v43 }
  0xa3   :  { %1095 = vmatpush3.bf16.msra.mxu1 %v1190_v14 }
  0xa5   :  { %1105 = vmatpush3.bf16.msra.mxu0 %v1193_v17 }
  0xa6   :  { %1106 = vmatprep.subr.bf16.mxu0 %v1331_v43 }
  0xa9   :  { %1107 = vmatpush3.bf16.msra.mxu0 %v1194_v18 }
  0xaa   :  { %1108 = vmatprep.subr.bf16.mxu0 %v1331_v43 }
  0xad   :  { %1109 = vmatpush3.bf16.msra.mxu0 %v1195_v19 }
  0xae   :  { %1110 = vmatprep.subr.bf16.mxu0 %v1331_v43 }
  0xb1   :  { %1111 = vmatpush3.bf16.msra.mxu0 %v1196_v20 }
  0xb2   :  { %1112 = vmatprep.subr.bf16.mxu0 %v1331_v43 }
  0xb5   :  { %1113 = vmatpush3.bf16.msra.mxu0 %v1197_v53 }
  0xb6   :  { %1114 = vmatprep.subr.bf16.mxu0 %v1331_v43 }
  0xb9   :  { %1115 = vmatpush3.bf16.msra.mxu0 %v1198_v54 }
 0x14f   :  { %v1004_v21 = vpop.f32.mrb[0].mxu0 }
 0x150   :  { %v1026_v22 = vpop.f32.mrb[0].mxu1  ;;  %v1005_v23 = vpop.f32.mrb[1].mxu0 }
 0x151   :  { %v1006_v24 = vadd.f32 %v1005_v23, %v1004_v21  ;;  %v1027_v25 = vpop.f32.mrb[1].mxu1  ;;  %v1007_v26 = vpop.f32.mrb[2].mxu0 }
 0x152   :  { %v1028_v27 = vadd.f32 %v1027_v25, %v1026_v22  ;;  %v1029_v28 = vpop.f32.mrb[2].mxu1  ;;  %v1008_v29 = vpop.f32.mrb[3].mxu0 }
 0x153   :  { %v1009_v30 = vadd.f32 %v1008_v29, %v1007_v26  ;;  %v1030_v31 = vpop.f32.mrb[3].mxu1 }
 0x154   :  { %v584_v32 = vadd.f32 %v1028_v27, %v1006_v24  ;;  %v1031_v33 = vadd.f32 %v1030_v31, %v1029_v28 }
 0x156   :  { %v587_v34 = vadd.f32 %v1031_v33, %v1009_v30 }
 0x158   :  { %v665_v35 = vpop.f32.mrb[4].mxu1 }
 0x159   :  { %v1078_v36 = vpop.f32.mrb[5].mxu1 }
 0x15a   :  { %v668_v37 = vpop.f32.mrb[6].mxu1 }
 0x15b   :  { %v1079_v38 = vpop.f32.mrb[7].mxu1 }
 0x16f   :  { %v1048_v39 = vpop.f32.mrb[4].mxu0 }
 0x170   :  { %v1049_v40 = vpop.f32.mrb[5].mxu0 }
 0x171   :  { %v1050_v41 = vadd.f32 %v1049_v40, %v1048_v39  ;;  %v1051_v42 = vpop.f32.mrb[6].mxu0 }
 0x172   :  { %v1052_v44 = vpop.f32.mrb[7].mxu0 }
 0x173   :  { %v625_v45 = vadd.f32 %v1050_v41, %v584_v32  ;;  %v1053_v46 = vadd.f32 %v1052_v44, %v1051_v42 }
 0x175   :  { %v666_v47 = vadd.f32 %v665_v35, %v625_v45  ;;  %v628_v48 = vadd.f32 %v1053_v46, %v587_v34 }
 0x177   :  { %v669_v49 = vadd.f32 %v668_v37, %v628_v48  ;;  %v672_v50 = vmax.f32 %v666_v47, 0.0 }
 0x179   :  { %v673_v51 = vmax.f32 %v669_v49, 0.0 }
 0x17b   :  { %v674_v52 = vpack.c.bf16 %v673_v51, %v672_v50 }
 0x17d   :  { %1097 = vmatmul.mubr.bf16.vlgmr.msra.gmra.mrb[8].mxu1 %v674_v52 }
 0x250   :  { %v773_v55 = vpop.f32.mrb[8].mxu1 }
 0x251   :  { %v1098_v56 = vpop.f32.mrb[9].mxu1  ;;  %v780_v58 = vmax.f32 %v773_v55, 0.0 }
 0x252   :  { %v776_v57 = vpop.f32.mrb[10].mxu1 }
 0x253   :  { %v781_v59 = vmax.f32 %v776_v57, 0.0  ;;  %v1099_v60 = vpop.f32.mrb[11].mxu1 }
 0x255   :  { %v782_v61 = vpack.c.bf16 %v781_v59, %v780_v58 }
 0x257   :  { %1117 = vmatmul.mubr.bf16.vlgmr.msra.gmra.mrb[8].mxu0 %v782_v61 }
 0x32a   :  { %v881_v62 = vpop.f32.mrb[8].mxu0 }
 0x32b   :  { %888 = vst [vmem:[#allocation12] sm:$0xff] %v881_v62  ;;  %v1118_v63 = vpop.f32.mrb[9].mxu0 }
 0x32c   :  { %v884_v0 = vpop.f32.mrb[10].mxu0 }
 0x32d   :  { %889 = vst [vmem:[#allocation12 + $0x8] sm:$0xff] %v884_v0  ;;  %v1119_v1 = vpop.f32.mrb[11].mxu0 }
 0x32e   :  { %1304 = shalt.err (!%p1301_p6)
}
 0x32f   :  { %s1305_s25 = scalar_lea.hbm %s1460_s5, 256 }
 0x330   :  { %p1306_p7 = scmp.ne.s32.totalorder %s1460_s5, %s1305_s25  ;;  %p1309_p8 = scmp.lt.u32.totalorder %s1305_s25, %s1460_s5 }
 0x332   :  { %p1311_p9 = pnand %p1309_p8, %p1306_p7 }
 0x334   :  { %1314 = shalt.err (!%p1311_p9)
}
 0x335   :  { %s1334_s30 = smov 128   ;;  %s1335_s6 = smov 8  }
 0x336   :  { %901 = dma.vmem_to_hbm [thread:$0]  %s896_s8, 256, %s1460_s5, [#allocation6], %s1334_s30, %s1334_s30, %s1335_s6  }
 0x337   :  { %1321 = dma.done.wait [#allocation6], 256  }
 0x338   :  { %1322 = vsyncadd [#allocation6], 4294967040 }
 0x339   :  { %905 = vsyncpa [#allocation5], 1 }
 0x33a   :  { %906 = vsyncpa [#allocation8], 1 }
 0x33b   :  { %907 = vsyncpa [#allocation11], 1 }
 0x33c   :  { %908 = vsyncpa [#allocation6], 1 }

</bundles_post_ra>
